<compile_context>
chip_gen: v6e
topology: v6e:2x2x1
jax: 0.10.0
libtpu: 0.0.40
codegen_flags: <defaults>
</compile_context>

<pallas_src>
import jax
import jax.numpy as jnp
from jax.experimental import pallas as pl
from jax.experimental.pallas import tpu as pltpu

_LANE = 128     # TPU vreg lane width
_SUBLANE = 8    # TPU vreg sublane count (f32)


def _ppo_actor_kernel(obs_ref, w1_ref, b1_ref, w2_ref, b2_ref,
                      w3_ref, b3_ref, out_ref):
    # obs is read once from HBM as f32 and cast to bf16 in-register.
    x = obs_ref[...].astype(jnp.bfloat16)                              # (TB, OBS)

    # --- extractor: Linear -> ReLU -> Linear -> ReLU (bf16 MXU, f32 accumulate) ---
    h1 = jnp.dot(x, w1_ref[...], preferred_element_type=jnp.float32) + b1_ref[...]
    h1 = jnp.maximum(h1, 0.0).astype(jnp.bfloat16)                     # (TB, Hp)
    h2 = jnp.dot(h1, w2_ref[...], preferred_element_type=jnp.float32) + b2_ref[...]
    h2 = jnp.maximum(h2, 0.0).astype(jnp.bfloat16)                     # (TB, Hp)

    # --- layer_out: Linear -> Softmax(dim=-1), all post-matmul math in f32 ---
    logits = jnp.dot(h2, w3_ref[...], preferred_element_type=jnp.float32) + b3_ref[...]
    m = jnp.max(logits, axis=-1, keepdims=True)
    e = jnp.exp(logits - m)
    # Exact division (not approx reciprocal) so probabilities sum to 1.
    out_ref[...] = (e / jnp.sum(e, axis=-1, keepdims=True)).astype(out_ref.dtype)


def prepare_params(params):
    """One-time parameter prep — call at load/init, NOT per forward.

    * matmul operands cast to bf16, biases kept f32,
    * hidden dim zero-padded to a multiple of 128 lanes (exact: padded hidden
      units have zero weights/bias, so they contribute nothing).
    """
    w1, b1, w2, b2, w3, b3 = params
    obs_dim, hidden = w1.shape
    action_dim = w3.shape[1]
    h_pad = -(-hidden // _LANE) * _LANE

    w1_p = jnp.zeros((obs_dim, h_pad), jnp.bfloat16).at[:, :hidden].set(
        w1.astype(jnp.bfloat16))
    b1_p = jnp.zeros((1, h_pad), jnp.float32).at[:, :hidden].set(
        b1.astype(jnp.float32).reshape(1, hidden))
    w2_p = jnp.zeros((h_pad, h_pad), jnp.bfloat16).at[:hidden, :hidden].set(
        w2.astype(jnp.bfloat16))
    b2_p = jnp.zeros((1, h_pad), jnp.float32).at[:, :hidden].set(
        b2.astype(jnp.float32).reshape(1, hidden))
    w3_p = jnp.zeros((h_pad, action_dim), jnp.bfloat16).at[:hidden, :].set(
        w3.astype(jnp.bfloat16))
    b3_p = b3.astype(jnp.float32).reshape(1, action_dim)
    return (w1_p, b1_p, w2_p, b2_p, w3_p, b3_p)


def ppo_actor_forward(obs, prepped_params, state=None, *, tile_b=1024,
                      core_parallel=False):
    """Mirrors PPOActor.forward: returns (softmax_probs, state).

    `prepped_params` must come from prepare_params (hoisted one-time prep).
    Set core_parallel=True on v7x (2 TensorCores) with a grid length >= 2.
    """
    w1, b1, w2, b2, w3, b3 = prepped_params
    B, obs_dim = obs.shape
    action_dim = w3.shape[1]

    # Batch tile: multiple of 8 sublanes, as large as the batch allows (big tiles
    # amortize per-step grid overhead).  The last grid block may be partial —
    # Pallas masks the boundary writeback, so no wrapper pad/slice is needed.
    tile_b = max(_SUBLANE, min(int(tile_b), -(-B // _SUBLANE) * _SUBLANE))
    tile_b = -(-tile_b // _SUBLANE) * _SUBLANE
    grid = (pl.cdiv(B, tile_b),)

    dim_sem = (pltpu.CORE_PARALLEL if core_parallel else "parallel",)

    # Weights/biases: same block every grid step -> stay resident in VMEM.
    # (pipeline_mode=pl.Buffered(1) would drop their redundant second buffer, but
    #  the VMEM saving is negligible here, so it is intentionally left off.)
    resident = lambda a: pl.BlockSpec(a.shape, lambda i, _nd=a.ndim: (0,) * _nd)

    out = pl.pallas_call(
        _ppo_actor_kernel,
        out_shape=jax.ShapeDtypeStruct((B, action_dim), jnp.float32),
        grid=grid,
        in_specs=[
            pl.BlockSpec((tile_b, obs_dim), lambda i: (i, 0)),
            resident(w1), resident(b1),
            resident(w2), resident(b2),
            resident(w3), resident(b3),
        ],
        out_specs=pl.BlockSpec((tile_b, action_dim), lambda i: (i, 0)),
        compiler_params=pltpu.CompilerParams(dimension_semantics=dim_sem),
    )(obs, w1, b1, w2, b2, w3, b3)

    return out, state


def init_params(key, obs_dim, hidden, action_dim):
    """Deterministic synthetic parameters (shapes implied by the module __init__)."""
    ks = jax.random.split(key, 6)
    scale = 0.1
    w1 = scale * jax.random.normal(ks[0], (obs_dim, hidden), jnp.float32)
    b1 = scale * jax.random.normal(ks[1], (1, hidden), jnp.float32)
    w2 = scale * jax.random.normal(ks[2], (hidden, hidden), jnp.float32)
    b2 = scale * jax.random.normal(ks[3], (1, hidden), jnp.float32)
    w3 = scale * jax.random.normal(ks[4], (hidden, action_dim), jnp.float32)
    b3 = scale * jax.random.normal(ks[5], (1, action_dim), jnp.float32)
    return (w1, b1, w2, b2, w3, b3)


def _reference(obs, params):
    """Pure-JAX reference with the same bf16 operand rounding as the kernel."""
    w1, b1, w2, b2, w3, b3 = params
    bf = lambda a: a.astype(jnp.bfloat16).astype(jnp.float32)
    hp = jax.lax.Precision.HIGHEST
    h1 = jnp.maximum(jnp.dot(bf(obs), bf(w1), precision=hp) + b1, 0.0)
    h2 = jnp.maximum(jnp.dot(bf(h1), bf(w2), precision=hp) + b2, 0.0)
    logits = jnp.dot(bf(h2), bf(w3), precision=hp) + b3
    return jax.nn.softmax(logits, axis=-1)


if __name__ == "__main__":
    # Small shapes; tile_b=128 deliberately exercises 3 grid steps including a
    # partial (44-row) last block.  Production default is tile_b=1024.
    B, OBS_DIM, HIDDEN, ACTION_DIM = 300, 32, 32, 8
    TILE_B = 128

    key = jax.random.PRNGKey(0)
    k_obs, k_par = jax.random.split(key)
    obs = jax.random.normal(k_obs, (B, OBS_DIM), jnp.float32)
    params = init_params(k_par, OBS_DIM, HIDDEN, ACTION_DIM)
    prepped = prepare_params(params)        # one-time prep, hoisted out of forward

    out, state = ppo_actor_forward(obs, prepped, state=None, tile_b=TILE_B)
    out = jax.block_until_ready(out)

    ref = _reference(obs, params)
    assert out.shape == (B, ACTION_DIM)
    assert state is None
    assert bool(jnp.all(jnp.isfinite(out)))
    assert bool(jnp.allclose(jnp.sum(out, axis=-1), 1.0, atol=1e-4))
    assert bool(jnp.allclose(out, ref, atol=3e-3, rtol=3e-2))

    print("KERNEL_OK")
</pallas_src>

<mosaic_0001>
module attributes {stable_mosaic.version = 11 : i64} {
  func.func @_ppo_actor_kernel(%arg0: i32, %arg1: memref<128x32xf32, #tpu.memory_space<vmem>>, %arg2: memref<32x128xbf16, #tpu.memory_space<vmem>>, %arg3: memref<1x128xf32, #tpu.memory_space<vmem>>, %arg4: memref<128x128xbf16, #tpu.memory_space<vmem>>, %arg5: memref<1x128xf32, #tpu.memory_space<vmem>>, %arg6: memref<128x8xbf16, #tpu.memory_space<vmem>>, %arg7: memref<1x8xf32, #tpu.memory_space<vmem>>, %arg8: memref<128x8xf32, #tpu.memory_space<vmem>>) attributes {dimension_semantics = [#tpu.dimension_semantics<parallel>], iteration_bounds = array<i64: 3>, scalar_prefetch = 0 : i64, scratch_operands = 0 : i64, tpu.core_type = #tpu.core_type<tc>, window_params = [{transform_indices = @transform_0, window_bounds = array<i64: 128, 32>}, {pipeline_mode = #tpu.pipeline_mode<synchronous>, transform_indices = @transform_1, window_bounds = array<i64: 32, 128>}, {pipeline_mode = #tpu.pipeline_mode<synchronous>, transform_indices = @transform_2, window_bounds = array<i64: 1, 128>}, {pipeline_mode = #tpu.pipeline_mode<synchronous>, transform_indices = @transform_3, window_bounds = array<i64: 128, 128>}, {pipeline_mode = #tpu.pipeline_mode<synchronous>, transform_indices = @transform_4, window_bounds = array<i64: 1, 128>}, {pipeline_mode = #tpu.pipeline_mode<synchronous>, transform_indices = @transform_5, window_bounds = array<i64: 128, 8>}, {pipeline_mode = #tpu.pipeline_mode<synchronous>, transform_indices = @transform_6, window_bounds = array<i64: 1, 8>}, {transform_indices = @transform_7, window_bounds = array<i64: 128, 8>}]} {
    %c0 = arith.constant 0 : index
    %c0_0 = arith.constant 0 : index
    %0 = vector.load %arg1[%c0, %c0_0] : memref<128x32xf32, #tpu.memory_space<vmem>>, vector<128x32xf32>
    %1 = arith.truncf %0 : vector<128x32xf32> to vector<128x32xbf16>
    %c0_1 = arith.constant 0 : index
    %c0_2 = arith.constant 0 : index
    %2 = vector.load %arg2[%c0_1, %c0_2] : memref<32x128xbf16, #tpu.memory_space<vmem>>, vector<32x128xbf16>
    %cst = arith.constant dense<0.000000e+00> : vector<128x128xf32>
    %3 = tpu.matmul %1, %2, %cst {dimension_numbers = #tpu.dot_dimension_numbers<[1], [0], [0], [1], [0, 0, 1, 1], [], []>} : vector<128x32xbf16>, vector<32x128xbf16>, vector<128x128xf32> -> vector<128x128xf32>
    %c0_3 = arith.constant 0 : index
    %c0_4 = arith.constant 0 : index
    %4 = vector.load %arg3[%c0_3, %c0_4] : memref<1x128xf32, #tpu.memory_space<vmem>>, vector<1x128xf32>
    %5 = vector.broadcast %4 : vector<1x128xf32> to vector<128x128xf32>
    %6 = arith.addf %3, %5 : vector<128x128xf32>
    %cst_5 = arith.constant 0.000000e+00 : f32
    %7 = vector.broadcast %cst_5 : f32 to vector<128x128xf32>
    %8 = arith.maximumf %6, %7 : vector<128x128xf32>
    %9 = arith.truncf %8 : vector<128x128xf32> to vector<128x128xbf16>
    %c0_6 = arith.constant 0 : index
    %c0_7 = arith.constant 0 : index
    %10 = vector.load %arg4[%c0_6, %c0_7] : memref<128x128xbf16, #tpu.memory_space<vmem>>, vector<128x128xbf16>
    %cst_8 = arith.constant dense<0.000000e+00> : vector<128x128xf32>
    %11 = tpu.matmul %9, %10, %cst_8 {dimension_numbers = #tpu.dot_dimension_numbers<[1], [0], [0], [1], [0, 0, 1, 1], [], []>} : vector<128x128xbf16>, vector<128x128xbf16>, vector<128x128xf32> -> vector<128x128xf32>
    %c0_9 = arith.constant 0 : index
    %c0_10 = arith.constant 0 : index
    %12 = vector.load %arg5[%c0_9, %c0_10] : memref<1x128xf32, #tpu.memory_space<vmem>>, vector<1x128xf32>
    %13 = vector.broadcast %12 : vector<1x128xf32> to vector<128x128xf32>
    %14 = arith.addf %11, %13 : vector<128x128xf32>
    %cst_11 = arith.constant 0.000000e+00 : f32
    %15 = vector.broadcast %cst_11 : f32 to vector<128x128xf32>
    %16 = arith.maximumf %14, %15 : vector<128x128xf32>
    %17 = arith.truncf %16 : vector<128x128xf32> to vector<128x128xbf16>
    %c0_12 = arith.constant 0 : index
    %c0_13 = arith.constant 0 : index
    %18 = vector.load %arg6[%c0_12, %c0_13] : memref<128x8xbf16, #tpu.memory_space<vmem>>, vector<128x8xbf16>
    %cst_14 = arith.constant dense<0.000000e+00> : vector<128x8xf32>
    %19 = tpu.matmul %17, %18, %cst_14 {dimension_numbers = #tpu.dot_dimension_numbers<[1], [0], [0], [1], [0, 0, 1, 1], [], []>} : vector<128x128xbf16>, vector<128x8xbf16>, vector<128x8xf32> -> vector<128x8xf32>
    %c0_15 = arith.constant 0 : index
    %c0_16 = arith.constant 0 : index
    %20 = vector.load %arg7[%c0_15, %c0_16] : memref<1x8xf32, #tpu.memory_space<vmem>>, vector<1x8xf32>
    %21 = vector.broadcast %20 : vector<1x8xf32> to vector<128x8xf32>
    %22 = arith.addf %19, %21 : vector<128x8xf32>
    %cst_17 = arith.constant dense<0xFF800000> : vector<128xf32>
    %23 = vector.multi_reduction <maximumf>, %22, %cst_17 [1] : vector<128x8xf32> to vector<128xf32>
    %24 = vector.shape_cast %23 : vector<128xf32> to vector<128x1xf32>
    %25 = vector.broadcast %24 : vector<128x1xf32> to vector<128x8xf32>
    %26 = arith.subf %22, %25 : vector<128x8xf32>
    %27 = math.exp %26 : vector<128x8xf32>
    %cst_18 = arith.constant dense<0.000000e+00> : vector<128xf32>
    %28 = vector.multi_reduction <add>, %27, %cst_18 [1] : vector<128x8xf32> to vector<128xf32>
    %29 = vector.shape_cast %28 : vector<128xf32> to vector<128x1xf32>
    %30 = vector.broadcast %29 : vector<128x1xf32> to vector<128x8xf32>
    %31 = arith.divf %27, %30 : vector<128x8xf32>
    %c0_19 = arith.constant 0 : index
    %c0_20 = arith.constant 0 : index
    %32 = vector.load %arg8[%c0_19, %c0_20] : memref<128x8xf32, #tpu.memory_space<vmem>>, vector<128x8xf32>
    tpu.vector_store %arg8[%c0_19, %c0_20], %31 {strides = array<i32>} : memref<128x8xf32, #tpu.memory_space<vmem>>, vector<128x8xf32>,
    return
  }
  func.func @transform_0(%arg0: i32) -> (i32, i32) {
    %c0_i32 = arith.constant 0 : i32
    %c0_i32_0 = arith.constant 0 : i32
    return %arg0, %c0_i32 : i32, i32
  }
  func.func @transform_1(%arg0: i32) -> (i32, i32) {
    %c0_i32 = arith.constant 0 : i32
    %c0_i32_0 = arith.constant 0 : i32
    %c0_i32_1 = arith.constant 0 : i32
    return %c0_i32, %c0_i32_0 : i32, i32
  }
  func.func @transform_2(%arg0: i32) -> (i32, i32) {
    %c0_i32 = arith.constant 0 : i32
    %c0_i32_0 = arith.constant 0 : i32
    %c0_i32_1 = arith.constant 0 : i32
    return %c0_i32, %c0_i32_0 : i32, i32
  }
  func.func @transform_3(%arg0: i32) -> (i32, i32) {
    %c0_i32 = arith.constant 0 : i32
    %c0_i32_0 = arith.constant 0 : i32
    %c0_i32_1 = arith.constant 0 : i32
    return %c0_i32, %c0_i32_0 : i32, i32
  }
  func.func @transform_4(%arg0: i32) -> (i32, i32) {
    %c0_i32 = arith.constant 0 : i32
    %c0_i32_0 = arith.constant 0 : i32
    %c0_i32_1 = arith.constant 0 : i32
    return %c0_i32, %c0_i32_0 : i32, i32
  }
  func.func @transform_5(%arg0: i32) -> (i32, i32) {
    %c0_i32 = arith.constant 0 : i32
    %c0_i32_0 = arith.constant 0 : i32
    %c0_i32_1 = arith.constant 0 : i32
    return %c0_i32, %c0_i32_0 : i32, i32
  }
  func.func @transform_6(%arg0: i32) -> (i32, i32) {
    %c0_i32 = arith.constant 0 : i32
    %c0_i32_0 = arith.constant 0 : i32
    %c0_i32_1 = arith.constant 0 : i32
    return %c0_i32, %c0_i32_0 : i32, i32
  }
  func.func @transform_7(%arg0: i32) -> (i32, i32) {
    %c0_i32 = arith.constant 0 : i32
    %c0_i32_0 = arith.constant 0 : i32
    return %arg0, %c0_i32 : i32, i32
  }
}

</mosaic_0001>

<bundles_post_ra>
// kernel: tpu_custom_call.1
= control target key start
LH: loop header
LB: loop body
LE: loop exit
PB: predicated region body
PF: predicated region fallthrough
CT: control target
= control target key end

     0   :  { %s1803_s24 = smov 0   ;;  %s1805_s25 = smov 0   ;;  %s2224_s0 = inlined_call_operand.vmem [shape: f32[300,32], index: 0, kind: input, shape index: {}]   ;;  %s2225_s1 = inlined_call_operand.vmem [shape: bf16[32,128], index: 1, kind: input, shape index: {}]   ;;  %s2226_s2 = inlined_call_operand.vmem [shape: f32[1,128], index: 2, kind: input, shape index: {}]   ;;  %s2227_s3 = inlined_call_operand.vmem [shape: bf16[128,128], index: 3, kind: input, shape index: {}]   ;;  %s2228_s4 = inlined_call_operand.vmem [shape: f32[1,128], index: 4, kind: input, shape index: {}]   ;;  %s2229_s5 = inlined_call_operand.vmem [shape: bf16[128,8], index: 5, kind: input, shape index: {}]   ;;  %s2230_s6 = inlined_call_operand.vmem [shape: f32[1,8], index: 6, kind: input, shape index: {}]   ;;  %s2231_s7 = inlined_call_operand.vmem [shape: f32[300,8], index: 7, kind: output, shape index: {}]  }
   0x1   :  { %s1807_s26 = smov 0  }
   0x2 LB: > { %s1816_s27 = sadd.s32 4294967295, %s1729_s26   ;;  %s1818_s28 = sadd.s32 1, %s1729_s26   ;;  %s1729_s26 = sphi %s1807_s26, %s2238_s26   ;;  %s1725_s25 = sphi %s1805_s25, %s2237_s25   ;;  %s1721_s24 = sphi %s1803_s24, %s2236_s24  }
   0x3   : > { %s173_s29 = ssub.s32 %s1729_s26, %s1818_s28  ;;  %s176_s30 = sadd.s32 1, %s1725_s25 }
   0x4   : > { %p174_p0 = scmp.eq.s32.totalorder %s173_s29, 0  ;;  %p186_p1 = scmp.ne.s32.totalorder %s1725_s25, %s1721_s24 }
   0x5   : > { %p187_p2 = scmp.eq.s32.totalorder %s1816_s27, 2  ;;  %p1326_p3 = scmp.ge.s32.totalorder %s1729_s26, 1 }
   0x6   : > { %s1826_s8 = scalar_select %p174_p0, %s1725_s25, %s176_s30  }
   0x7   : > { %p1828_p4 = por %p187_p2, %p186_p1  ;;  %p246_p5 = scmp.lt.s32.totalorder %s1729_s26, 4 }
   0x9   : > { %p247_p6 = pnand %p1326_p3, %p246_p5 }
   0xa   : > { %s1836_s12 = sshll.u32 (!%p247_p6), %s1816_s27, 4  ;;  %s278_s30 = sand.u32 (!%p247_p6), 1, %s1721_s24  }
   0xb   : > { %250 = sbr.rel (%p247_p6) target bundleno = 1020 (0x3fc), region = 48  ;;  %p286_p7 = scmp.lt.s32.totalorder (!%p247_p6), %s1836_s12, 37 }
   0xc   : > { %s1327_s10 = sshll.u32 (!%p247_p6), %s278_s30, 7 }
   0xd   : > { %s2075_s11 = scalar_lea.vmem (!%p247_p6), [#allocation2], %s1327_s10  }
  0x10   : > { %v1593_v0 = vld [vmem:[%s2225_s1 + $0x8] sm:$0xff]   ;;  %v1594_v1 = vld [vmem:[%s2225_s1] sm:$0xff]   ;;  %v1595_v2 = vld [vmem:[%s2227_s3 + $0x38] sm:$0xff]   ;;  %s287_s17 = scalar_select %p286_p7, %s1836_s12, 37  ;;  %vm348_vm0 = vcmask 261120   ;;  %vm854_vm1 = vcmask 64512  }
  0x11   : > { %1421 = vmatprep.subr.bf16.mxu0 %v1593_v0  ;;  %v1596_v3 = vld [vmem:[%s2227_s3 + $0x30] sm:$0xff]   ;;  %1441 = vmatprep.subr.bf16.mxu1 %v1595_v2  ;;  %v1597_v4 = vld [vmem:[%s2227_s3 + $0x28] sm:$0xff]   ;;  %v1598_v14 = vld [vmem:[%s2227_s3 + $0x20] sm:$0xff]   ;;  %s1055_s24 = ssub.s32 (%p1828_p4), 38, %s1836_s12  ;;  %s1376_s13 = sshll.u32 (%p1828_p4), %s1816_s27, 7 }
  0x12   : > { %1422 = vmatpush3.bf16.msra.mxu0 %v1593_v0  ;;  %s1329_s20 = sshll.u32 %s287_s17, 3  ;;  %1442 = vmatpush3.bf16.msra.mxu1 %v1595_v2  ;;  %v1599_v19 = vld [vmem:[%s2227_s3 + $0x18] sm:$0xff]   ;;  %v1600_v31 = vld [vmem:[%s2227_s3 + $0x10] sm:$0xff]   ;;  %v1601_v32 = vld [vmem:[%s2227_s3 + $0x8] sm:$0xff]   ;;  %p1056_p8 = scmp.lt.s32.totalorder (%p1828_p4), %s1055_s24, 16 }
  0x13   : > { %1423 = vmatprep.subr.bf16.mxu0 %v1594_v1  ;;  %s1852_s23 = scalar_lea.vmem %s2224_s0, %s1329_s20  ;;  %1443 = vmatprep.subr.bf16.mxu1 %v1596_v3  ;;  %v1602_v33 = vld [vmem:[%s2227_s3] sm:$0xff]   ;;  %v1603_v34 = vld [vmem:[%s2229_s5 + $0x38] sm:$0xff]   ;;  %v1604_v35 = vld [vmem:[%s2229_s5 + $0x30] sm:$0xff]   ;;  %s2131_s16 = scalar_lea.vmem (%p1828_p4), %s2231_s7, %s1376_s13  }
  0x14   : > { %v301_v5 = vld [vmem:[%s1852_s23] sm:$0xff]  ;;  %v302_v6 = vld [vmem:[%s1852_s23 + $0x8] sm:$0xff]  ;;  %v303_v7 = vld [vmem:[%s1852_s23 + $0x10] sm:$0xff] }
  0x15   : > { %v317_v8 = vpack.c.bf16 %v302_v6, %v301_v5  ;;  %v304_v9 = vld [vmem:[%s1852_s23 + $0x18] sm:$0xff]  ;;  %v305_v10 = vld [vmem:[%s1852_s23 + $0x20] sm:$0xff]  ;;  %v306_v11 = vld [vmem:[%s1852_s23 + $0x28] sm:$0xff] }
  0x16   : > { %1424 = vmatpush3.bf16.msra.mxu0 %v1594_v1  ;;  %v318_v12 = vpack.c.bf16 %v304_v9, %v303_v7  ;;  %v319_v13 = vpack.c.bf16 %v306_v11, %v305_v10  ;;  %1444 = vmatpush3.bf16.msra.mxu1 %v1596_v3  ;;  %v307_v15 = vld [vmem:[%s1852_s23 + $0x30] sm:$0xff]  ;;  %v308_v16 = vld [vmem:[%s1852_s23 + $0x38] sm:$0xff]  ;;  %v309_v17 = vld [vmem:[%s1852_s23 + $0x40] sm:$0xff] }
  0x17   : > { %1425 = vmatprep.mubr.msk.bf16.mxu0 %vm348_vm0, %v317_v8  ;;  %1445 = vmatprep.subr.bf16.mxu1 %v1597_v4  ;;  %v310_v18 = vld [vmem:[%s1852_s23 + $0x48] sm:$0xff]  ;;  %v320_v20 = vpack.c.bf16 %v308_v16, %v307_v15  ;;  %v311_v22 = vld [vmem:[%s1852_s23 + $0x50] sm:$0xff]  ;;  %v312_v23 = vld [vmem:[%s1852_s23 + $0x58] sm:$0xff] }
  0x18   : > { %v321_v21 = vpack.c.bf16 %v310_v18, %v309_v17  ;;  %v313_v24 = vld [vmem:[%s1852_s23 + $0x60] sm:$0xff]  ;;  %v314_v25 = vld [vmem:[%s1852_s23 + $0x68] sm:$0xff]  ;;  %v322_v26 = vpack.c.bf16 %v312_v23, %v311_v22  ;;  %v315_v28 = vld [vmem:[%s1852_s23 + $0x70] sm:$0xff]  ;;  %1473 = vmatprep.subr.bf16.mxu0 %v1603_v34 }
  0x19   : > { %1426 = vmatmul.mubr.msk.bf16.vlgmr.msra.gmra.mxu0 %vm348_vm0, %v318_v12  ;;  %v323_v27 = vpack.c.bf16 %v314_v25, %v313_v24  ;;  %v316_v29 = vld [vmem:[%s1852_s23 + $0x78] sm:$0xff]  ;;  %v1605_v36 = vld [vmem:[%s2229_s5 + $0x28] sm:$0xff]   ;;  %v1606_v37 = vld [vmem:[%s2229_s5 + $0x20] sm:$0xff]  }
  0x1a   : > { %1429 = vmatprep.mubr.msk.bf16.mxu0 %vm348_vm0, %v319_v13  ;;  %1446 = vmatpush3.bf16.msra.mxu1 %v1597_v4  ;;  %v324_v30 = vpack.c.bf16 %v316_v29, %v315_v28  ;;  %v1607_v38 = vld [vmem:[%s2229_s5 + $0x18] sm:$0xff]   ;;  %v1330_v41 = vld [vmem:[%s2226_s2] ss:$0 sm:$0xff] }
  0x1b   : > { %1447 = vmatprep.subr.bf16.mxu1 %v1598_v14  ;;  %1474 = vmatpush3.bf16.msra.mxu0 %v1603_v34  ;;  %v1610_v34 = vld [vmem:[%s2229_s5] sm:$0xff]  }
  0x1c   : > { %1475 = vmatprep.subr.bf16.mxu0 %v1604_v35 }
  0x1e   : > { %1448 = vmatpush3.bf16.msra.mxu1 %v1598_v14 }
  0x1f   : > { %1449 = vmatprep.subr.bf16.mxu1 %v1599_v19  ;;  %1476 = vmatpush3.bf16.msra.mxu0 %v1604_v35 }
  0x20   : > { %1477 = vmatprep.subr.bf16.mxu0 %v1605_v36 }
  0x21   : > { %1430 = vmatmul.mubr.msk.bf16.gmra.mxu0 %vm348_vm0, %v320_v20 }
  0x22   : > { %1433 = vmatprep.mubr.msk.bf16.mxu0 %vm348_vm0, %v321_v21  ;;  %1450 = vmatpush3.bf16.msra.mxu1 %v1599_v19 }
  0x23   : > { %1451 = vmatprep.subr.bf16.mxu1 %v1600_v31  ;;  %1478 = vmatpush3.bf16.msra.mxu0 %v1605_v36 }
  0x24   : > { %1479 = vmatprep.subr.bf16.mxu0 %v1606_v37 }
  0x26   : > { %1452 = vmatpush3.bf16.msra.mxu1 %v1600_v31 }
  0x27   : > { %1453 = vmatprep.subr.bf16.mxu1 %v1601_v32  ;;  %1480 = vmatpush3.bf16.msra.mxu0 %v1606_v37  ;;  %v1341_v37 = vld [vmem:[%s2228_s4] ss:$0 sm:$0xff] }
  0x28   : > { %1481 = vmatprep.subr.bf16.mxu0 %v1607_v38 }
  0x29   : > { %1434 = vmatmul.mubr.msk.bf16.gmra.mxu0 %vm348_vm0, %v322_v26 }
  0x2a   : > { %1437 = vmatprep.mubr.msk.bf16.mxu0 %vm348_vm0, %v323_v27  ;;  %1454 = vmatpush3.bf16.msra.mxu1 %v1601_v32  ;;  %v1608_v32 = vld [vmem:[%s2229_s5 + $0x10] sm:$0xff]  }
  0x2b   : > { %1455 = vmatprep.subr.bf16.mxu1 %v1602_v33  ;;  %1482 = vmatpush3.bf16.msra.mxu0 %v1607_v38 }
  0x2c   : > { %1483 = vmatprep.subr.bf16.mxu0 %v1608_v32 }
  0x2e   : > { %1456 = vmatpush3.bf16.msra.mxu1 %v1602_v33  ;;  %v1609_v33 = vld [vmem:[%s2229_s5 + $0x8] sm:$0xff]  }
  0x2f   : > { %1484 = vmatpush3.bf16.msra.mxu0 %v1608_v32 }
  0x30   : > { %1485 = vmatprep.subr.bf16.mxu0 %v1609_v33 }
  0x31   : > { %1438 = vmatmul.mubr.msk.bf16.gmra.mxu0 %vm348_vm0, %v324_v30 }
  0x33   : > { %1486 = vmatpush3.bf16.msra.mxu0 %v1609_v33 }
  0x34   : > { %1487 = vmatprep.subr.bf16.mxu0 %v1610_v34 }
  0x37   : > { %1488 = vmatpush3.bf16.msra.mxu0 %v1610_v34 }
  0xd9   : > { %v1427_v39 = vpop.f32.mrf.mxu0 }
  0xda   : > { %v416_v45 = vadd.f32 %v1427_v39, %v1330_v41 }
  0xdb   : > { %v407_v40 = vpop.f32.mrf.mxu0 }
  0xdc   : > { %v408_v43 = vadd.f32 %v1330_v41, %v407_v40  ;;  %v472_v52 = vmax.f32 %v416_v45, 0.0 }
  0xdd   : > { %v1428_v42 = vpop.f32.mrf.mxu0 }
  0xde   : > { %v419_v44 = vadd.f32 %v1428_v42, %v1330_v41  ;;  %v470_v50 = vmax.f32 %v408_v43, 0.0 }
  0xdf   : > { %v410_v46 = vpop.f32.mrf.mxu0 }
  0xe0   : > { %v411_v47 = vadd.f32 %v1330_v41, %v410_v46  ;;  %v473_v48 = vmax.f32 %v419_v44, 0.0 }
  0xe1   : > { %v1431_v49 = vpop.f32.mrf.mxu0 }
  0xe2   : > { %v471_v51 = vmax.f32 %v411_v47, 0.0  ;;  %v487_v55 = vpack.c.bf16 %v473_v48, %v472_v52  ;;  %v432_v59 = vadd.f32 %v1431_v49, %v1330_v41 }
  0xe3   : > { %v423_v53 = vpop.f32.mrf.mxu0 }
  0xe4   : > { %v486_v54 = vpack.c.bf16 %v471_v51, %v470_v50  ;;  %v424_v57 = vadd.f32 %v1330_v41, %v423_v53  ;;  %v476_v2 = vmax.f32 %v432_v59, 0.0 }
  0xe5   : > { %v1432_v56 = vpop.f32.mrf.mxu0 }
  0xe6   : > { %v435_v58 = vadd.f32 %v1432_v56, %v1330_v41  ;;  %1457 = vmatprep.mubr.bf16.mxu1 %v486_v54  ;;  %v474_v0 = vmax.f32 %v424_v57, 0.0 }
  0xe7   : > { %v426_v60 = vpop.f32.mrf.mxu0  ;;  %1458 = vmatmul.mubr.bf16.vlgmr.msra.gmra.mxu1 %v487_v55 }
  0xe8   : > { %v427_v61 = vadd.f32 %v1330_v41, %v426_v60  ;;  %v477_v62 = vmax.f32 %v435_v58, 0.0 }
  0xe9   : > { %v1435_v63 = vpop.f32.mrf.mxu0 }
  0xea   : > { %v475_v1 = vmax.f32 %v427_v61, 0.0  ;;  %v489_v5 = vpack.c.bf16 %v477_v62, %v476_v2  ;;  %v448_v9 = vadd.f32 %v1435_v63, %v1330_v41 }
  0xeb   : > { %v439_v3 = vpop.f32.mrf.mxu0 }
  0xec   : > { %v488_v4 = vpack.c.bf16 %v475_v1, %v474_v0  ;;  %v440_v7 = vadd.f32 %v1330_v41, %v439_v3  ;;  %v480_v16 = vmax.f32 %v448_v9, 0.0 }
  0xed   : > { %v1436_v6 = vpop.f32.mrf.mxu0 }
  0xee   : > { %v451_v8 = vadd.f32 %v1436_v6, %v1330_v41  ;;  %1461 = vmatprep.mubr.bf16.mxu1 %v488_v4  ;;  %v478_v14 = vmax.f32 %v440_v7, 0.0 }
  0xef   : > { %v442_v10 = vpop.f32.mrf.mxu0  ;;  %1462 = vmatmul.mubr.bf16.gmra.mxu1 %v489_v5 }
  0xf0   : > { %v443_v11 = vadd.f32 %v1330_v41, %v442_v10  ;;  %v481_v12 = vmax.f32 %v451_v8, 0.0 }
  0xf1   : > { %v1439_v13 = vpop.f32.mrf.mxu0 }
  0xf2   : > { %v479_v15 = vmax.f32 %v443_v11, 0.0  ;;  %v491_v19 = vpack.c.bf16 %v481_v12, %v480_v16  ;;  %v464_v23 = vadd.f32 %v1439_v13, %v1330_v41 }
  0xf3   : > { %v455_v17 = vpop.f32.mrf.mxu0 }
  0xf4   : > { %v490_v18 = vpack.c.bf16 %v479_v15, %v478_v14  ;;  %v456_v21 = vadd.f32 %v1330_v41, %v455_v17  ;;  %v484_v29 = vmax.f32 %v464_v23, 0.0 }
  0xf5   : > { %v1440_v20 = vpop.f32.mrf.mxu0 }
  0xf6   : > { %v467_v22 = vadd.f32 %v1440_v20, %v1330_v41  ;;  %1465 = vmatprep.mubr.bf16.mxu1 %v490_v18  ;;  %v482_v27 = vmax.f32 %v456_v21, 0.0 }
  0xf7   : > { %v458_v24 = vpop.f32.mrf.mxu0  ;;  %1466 = vmatmul.mubr.bf16.gmra.mxu1 %v491_v19 }
  0xf8   : > { %v459_v25 = vadd.f32 %v1330_v41, %v458_v24  ;;  %v485_v26 = vmax.f32 %v467_v22, 0.0 }
  0xfa   : > { %v483_v28 = vmax.f32 %v459_v25, 0.0  ;;  %v493_v31 = vpack.c.bf16 %v485_v26, %v484_v29 }
  0xfc   : > { %v492_v30 = vpack.c.bf16 %v483_v28, %v482_v27  ;;  %v1350_v28 = vld [vmem:[%s2230_s6] ss:$0 sm:$0xff] }
  0xfe   : > { %1469 = vmatprep.mubr.bf16.mxu1 %v492_v30 }
  0xff   : > { %1470 = vmatmul.mubr.bf16.gmra.mxu1 %v493_v31 }
 0x1a7   : > { %v1459_v35 = vpop.f32.mrf.mxu1 }
 0x1a8   : > { %v608_v41 = vadd.f32 %v1459_v35, %v1341_v37 }
 0x1a9   : > { %v599_v36 = vpop.f32.mrf.mxu1 }
 0x1aa   : > { %v600_v39 = vadd.f32 %v1341_v37, %v599_v36  ;;  %v664_v48 = vmax.f32 %v608_v41, 0.0 }
 0x1ab   : > { %v1460_v38 = vpop.f32.mrf.mxu1 }
 0x1ac   : > { %v611_v40 = vadd.f32 %v1460_v38, %v1341_v37  ;;  %v662_v46 = vmax.f32 %v600_v39, 0.0 }
 0x1ad   : > { %v602_v42 = vpop.f32.mrf.mxu1 }
 0x1ae   : > { %v603_v43 = vadd.f32 %v1341_v37, %v602_v42  ;;  %v665_v44 = vmax.f32 %v611_v40, 0.0 }
 0x1af   : > { %v1463_v45 = vpop.f32.mrf.mxu1 }
 0x1b0   : > { %v663_v47 = vmax.f32 %v603_v43, 0.0  ;;  %v679_v51 = vpack.c.bf16 %v665_v44, %v664_v48  ;;  %v624_v55 = vadd.f32 %v1463_v45, %v1341_v37 }
 0x1b1   : > { %v615_v49 = vpop.f32.mrf.mxu1 }
 0x1b2   : > { %v678_v50 = vpack.c.bf16 %v663_v47, %v662_v46  ;;  %v616_v53 = vadd.f32 %v1341_v37, %v615_v49  ;;  %v668_v62 = vmax.f32 %v624_v55, 0.0 }
 0x1b3   : > { %v1464_v52 = vpop.f32.mrf.mxu1 }
 0x1b4   : > { %v627_v54 = vadd.f32 %v1464_v52, %v1341_v37  ;;  %1489 = vmatprep.mubr.bf16.mxu0 %v678_v50  ;;  %v666_v60 = vmax.f32 %v616_v53, 0.0 }
 0x1b5   : > { %v618_v56 = vpop.f32.mrf.mxu1  ;;  %1490 = vmatmul.mubr.bf16.vlgmr.msra.gmra.mxu0 %v679_v51 }
 0x1b6   : > { %v619_v57 = vadd.f32 %v1341_v37, %v618_v56  ;;  %v669_v58 = vmax.f32 %v627_v54, 0.0 }
 0x1b7   : > { %v1467_v59 = vpop.f32.mrf.mxu1 }
 0x1b8   : > { %v667_v61 = vmax.f32 %v619_v57, 0.0  ;;  %v681_v1 = vpack.c.bf16 %v669_v58, %v668_v62  ;;  %v640_v5 = vadd.f32 %v1467_v59, %v1341_v37 }
 0x1b9   : > { %v631_v63 = vpop.f32.mrf.mxu1 }
 0x1ba   : > { %v680_v0 = vpack.c.bf16 %v667_v61, %v666_v60  ;;  %v632_v3 = vadd.f32 %v1341_v37, %v631_v63  ;;  %v672_v12 = vmax.f32 %v640_v5, 0.0 }
 0x1bb   : > { %v1468_v2 = vpop.f32.mrf.mxu1 }
 0x1bc   : > { %v643_v4 = vadd.f32 %v1468_v2, %v1341_v37  ;;  %1493 = vmatprep.mubr.bf16.mxu0 %v680_v0  ;;  %v670_v10 = vmax.f32 %v632_v3, 0.0 }
 0x1bd   : > { %v634_v6 = vpop.f32.mrf.mxu1  ;;  %1494 = vmatmul.mubr.bf16.gmra.mxu0 %v681_v1 }
 0x1be   : > { %v635_v7 = vadd.f32 %v1341_v37, %v634_v6  ;;  %v673_v8 = vmax.f32 %v643_v4, 0.0 }
 0x1bf   : > { %v1471_v9 = vpop.f32.mrf.mxu1 }
 0x1c0   : > { %v671_v11 = vmax.f32 %v635_v7, 0.0  ;;  %v683_v15 = vpack.c.bf16 %v673_v8, %v672_v12  ;;  %v656_v19 = vadd.f32 %v1471_v9, %v1341_v37 }
 0x1c1   : > { %v647_v13 = vpop.f32.mrf.mxu1 }
 0x1c2   : > { %v682_v14 = vpack.c.bf16 %v671_v11, %v670_v10  ;;  %v648_v17 = vadd.f32 %v1341_v37, %v647_v13  ;;  %v676_v25 = vmax.f32 %v656_v19, 0.0 }
 0x1c3   : > { %v1472_v16 = vpop.f32.mrf.mxu1 }
 0x1c4   : > { %v659_v18 = vadd.f32 %v1472_v16, %v1341_v37  ;;  %1497 = vmatprep.mubr.bf16.mxu0 %v682_v14  ;;  %v674_v23 = vmax.f32 %v648_v17, 0.0 }
 0x1c5   : > { %v650_v20 = vpop.f32.mrf.mxu1  ;;  %1498 = vmatmul.mubr.bf16.gmra.mxu0 %v683_v15 }
 0x1c6   : > { %v651_v21 = vadd.f32 %v1341_v37, %v650_v20  ;;  %v677_v22 = vmax.f32 %v659_v18, 0.0 }
 0x1c8   : > { %v675_v24 = vmax.f32 %v651_v21, 0.0  ;;  %v685_v27 = vpack.c.bf16 %v677_v22, %v676_v25 }
 0x1ca   : > { %v684_v26 = vpack.c.bf16 %v675_v24, %v674_v23 }
 0x1cc   : > { %1501 = vmatprep.mubr.bf16.mxu0 %v684_v26 }
 0x1cd   : > { %1502 = vmatmul.mubr.bf16.gmra.mxu0 %v685_v27 }
 0x275   : > { %v1491_v29 = vpop.f32.mrf.mxu0 }
 0x276   : > { %v1929_v30 = vadd.f32 %v1491_v29, %v1350_v28 }
 0x277   : > { %v791_v31 = vpop.f32.mrf.mxu0 }
 0x278   : > { %v1931_v32 = vadd.f32 %v1350_v28, %v791_v31  ;;  %v861_v33 = vsel %vm854_vm1, %v1929_v30, -inf }
 0x279   : > { %862 = vmax.xlane.f32.xlu1 %v861_v33  ;;  %v1492_v34 = vpop.f32.mrf.mxu0 }
 0x27a   : > { %v1935_v35 = vadd.f32 %v1492_v34, %v1350_v28  ;;  %v855_v36 = vsel %vm854_vm1, %v1931_v32, -inf }
 0x27b   : > { %v794_v37 = vpop.f32.mrf.mxu0  ;;  %856 = vmax.xlane.f32.xlu0 %v855_v36 }
 0x27c   : > { %v1939_v38 = vadd.f32 %v1350_v28, %v794_v37  ;;  %v864_v39 = vsel %vm854_vm1, %v1935_v35, -inf }
 0x27d   : > { %865 = vmax.xlane.f32.xlu1 %v864_v39  ;;  %v1495_v40 = vpop.f32.mrf.mxu0 }
 0x27e   : > { %v1943_v41 = vadd.f32 %v1495_v40, %v1350_v28  ;;  %v858_v42 = vsel %vm854_vm1, %v1939_v38, -inf }
 0x27f   : > { %v807_v43 = vpop.f32.mrf.mxu0  ;;  %859 = vmax.xlane.f32.xlu0 %v858_v42 }
 0x280   : > { %v1947_v45 = vadd.f32 %v1350_v28, %v807_v43  ;;  %v873_v47 = vsel %vm854_vm1, %v1943_v41, -inf }
 0x281   : > { %v1496_v44 = vpop.f32.mrf.mxu0 }
 0x282   : > { %v1949_v46 = vadd.f32 %v1496_v44, %v1350_v28  ;;  %v867_v53 = vsel %vm854_vm1, %v1947_v45, -inf }
 0x283   : > { %v810_v48 = vpop.f32.mrf.mxu0  ;;  %874 = vmax.xlane.f32.xlu0 %v873_v47 }
 0x284   : > { %v1953_v49 = vadd.f32 %v1350_v28, %v810_v48  ;;  %v876_v50 = vsel %vm854_vm1, %v1949_v46, -inf }
 0x285   : > { %877 = vmax.xlane.f32.xlu1 %v876_v50  ;;  %v1499_v51 = vpop.f32.mrf.mxu0 }
 0x286   : > { %v1957_v52 = vadd.f32 %v1499_v51, %v1350_v28  ;;  %v870_v55 = vsel %vm854_vm1, %v1953_v49, -inf }
 0x287   : > { %v823_v54 = vpop.f32.mrf.mxu0  ;;  %868 = vmax.xlane.f32.xlu0 %v867_v53 }
 0x288   : > { %v1963_v57 = vadd.f32 %v1350_v28, %v823_v54  ;;  %v885_v59 = vsel %vm854_vm1, %v1957_v52, -inf }
 0x289   : > { %v1500_v56 = vpop.f32.mrf.mxu0  ;;  %871 = vmax.xlane.f32.xlu1 %v870_v55 }
 0x28a   : > { %v1965_v58 = vadd.f32 %v1500_v56, %v1350_v28  ;;  %v879_v0 = vsel %vm854_vm1, %v1963_v57, -inf }
 0x28b   : > { %v826_v60 = vpop.f32.mrf.mxu0  ;;  %886 = vmax.xlane.f32.xlu0 %v885_v59 }
 0x28c   : > { %v1969_v61 = vadd.f32 %v1350_v28, %v826_v60  ;;  %v888_v62 = vsel %vm854_vm1, %v1965_v58, -inf }
 0x28d   : > { %v1503_v63 = vpop.f32.mrf.mxu0  ;;  %889 = vmax.xlane.f32.xlu1 %v888_v62 }
 0x28e   : > { %v882_v3 = vsel %vm854_vm1, %v1969_v61, -inf  ;;  %v1979_v5 = vadd.f32 %v1503_v63, %v1350_v28 }
 0x28f   : > { %v839_v1 = vpop.f32.mrf.mxu0  ;;  %880 = vmax.xlane.f32.xlu0 %v879_v0 }
 0x290   : > { %v1975_v2 = vadd.f32 %v1350_v28, %v839_v1  ;;  %v897_v11 = vsel %vm854_vm1, %v1979_v5, -inf }
 0x291   : > { %v1504_v4 = vpop.f32.mrf.mxu0  ;;  %883 = vmax.xlane.f32.xlu1 %v882_v3 }
 0x292   : > { %v891_v6 = vsel %vm854_vm1, %v1975_v2, -inf  ;;  %v1985_v9 = vadd.f32 %v1504_v4, %v1350_v28 }
 0x293   : > { %v842_v7 = vpop.f32.mrf.mxu0  ;;  %892 = vmax.xlane.f32.xlu0 %v891_v6 }
 0x294   : > { %v1983_v8 = vadd.f32 %v1350_v28, %v842_v7  ;;  %v900_v12 = vsel %vm854_vm1, %v1985_v9, -inf }
 0x296   : > { %v894_v10 = vsel %vm854_vm1, %v1983_v8, -inf }
 0x297   : > { %895 = vmax.xlane.f32.xlu1 %v894_v10  ;;  %898 = vmax.xlane.f32.xlu0 %v897_v11 }
 0x29b   : > { %901 = vmax.xlane.f32.xlu1 %v900_v12 }
 0x302   : > { %v863_v13 = vpop.xlane.xlu1 %862 }
 0x303   : > { %v905_v14 = vsub.f32 %v1929_v30, %v863_v13 }
 0x304   : > { %v857_v15 = vpop.xlane.xlu0 %856 }
 0x305   : > { %v923_v16 = vmul.f32 1.442695, %v905_v14  ;;  %v903_v17 = vsub.f32 %v1931_v32, %v857_v15 }
 0x306   : > { %v866_v18 = vpop.xlane.xlu1 %865 }
 0x307   : > { %1611 = vpow2.f32 %v923_v16  ;;  %v919_v19 = vmul.f32 1.442695, %v903_v17  ;;  %v906_v20 = vsub.f32 %v1935_v35, %v866_v18 }
 0x308   : > { %v860_v21 = vpop.xlane.xlu0 %859 }
 0x309   : > { %1613 = vpow2.f32 %v919_v19  ;;  %v925_v22 = vmul.f32 1.442695, %v906_v20  ;;  %v904_v23 = vsub.f32 %v1939_v38, %v860_v21 }
 0x30b   : > { %1615 = vpow2.f32 %v925_v22  ;;  %v921_v24 = vmul.f32 1.442695, %v904_v23 }
 0x30c   : > { %v875_v25 = vpop.xlane.xlu0 %874 }
 0x30d   : > { %1617 = vpow2.f32 %v921_v24  ;;  %v909_v26 = vsub.f32 %v1943_v41, %v875_v25 }
 0x30e   : > { %v878_v27 = vpop.xlane.xlu1 %877 }
 0x30f   : > { %v931_v28 = vmul.f32 1.442695, %v909_v26  ;;  %v910_v29 = vsub.f32 %v1949_v46, %v878_v27 }
 0x310   : > { %v869_v30 = vpop.xlane.xlu0 %868 }
 0x311   : > { %1619 = vpow2.f32 %v931_v28  ;;  %v933_v31 = vmul.f32 1.442695, %v910_v29  ;;  %v907_v32 = vsub.f32 %v1947_v45, %v869_v30 }
 0x312   : > { %v872_v33 = vpop.xlane.xlu1 %871 }
 0x313   : > { %1621 = vpow2.f32 %v933_v31  ;;  %v927_v34 = vmul.f32 1.442695, %v907_v32  ;;  %v908_v35 = vsub.f32 %v1953_v49, %v872_v33 }
 0x314   : > { %v2001_v36 = vpop.eup %1611  ;;  %v887_v37 = vpop.xlane.xlu0 %886 }
 0x315   : > { %1623 = vpow2.f32 %v927_v34  ;;  %v929_v38 = vmul.f32 1.442695, %v908_v35  ;;  %v913_v39 = vsub.f32 %v1957_v52, %v887_v37  ;;  %v957_v40 = vsel %vm854_vm1, %v2001_v36, 0.0 }
 0x316   : > { %v2006_v41 = vpop.eup %1613  ;;  %v890_v42 = vpop.xlane.xlu1 %889  ;;  %958 = vadd.xlane.f32.xlu0 %v957_v40 }
 0x317   : > { %1625 = vpow2.f32 %v929_v38  ;;  %v939_v43 = vmul.f32 1.442695, %v913_v39  ;;  %v914_v44 = vsub.f32 %v1965_v58, %v890_v42  ;;  %v951_v47 = vsel %vm854_vm1, %v2006_v41, 0.0 }
 0x318   : > { %v2009_v45 = vpop.eup %1615  ;;  %v881_v46 = vpop.xlane.xlu0 %880 }
 0x319   : > { %1627 = vpow2.f32 %v939_v43  ;;  %v941_v48 = vmul.f32 1.442695, %v914_v44  ;;  %v911_v49 = vsub.f32 %v1963_v57, %v881_v46  ;;  %v960_v50 = vsel %vm854_vm1, %v2009_v45, 0.0 }
 0x31a   : > { %v2016_v51 = vpop.eup %1617  ;;  %961 = vadd.xlane.f32.xlu1 %v960_v50  ;;  %v884_v52 = vpop.xlane.xlu1 %883  ;;  %952 = vadd.xlane.f32.xlu0 %v951_v47 }
 0x31b   : > { %1629 = vpow2.f32 %v941_v48  ;;  %v935_v53 = vmul.f32 1.442695, %v911_v49  ;;  %v912_v54 = vsub.f32 %v1969_v61, %v884_v52  ;;  %v954_v57 = vsel %vm854_vm1, %v2016_v51, 0.0 }
 0x31c   : > { %v893_v55 = vpop.xlane.xlu0 %892 }
 0x31d   : > { %1631 = vpow2.f32 %v935_v53  ;;  %v937_v56 = vmul.f32 1.442695, %v912_v54  ;;  %v915_v58 = vsub.f32 %v1975_v2, %v893_v55 }
 0x31e   : > { %v2022_v59 = vpop.eup %1619  ;;  %955 = vadd.xlane.f32.xlu1 %v954_v57 }
 0x31f   : > { %1633 = vpow2.f32 %v937_v56  ;;  %v943_v60 = vmul.f32 1.442695, %v915_v58  ;;  %v969_v62 = vsel %vm854_vm1, %v2022_v59, 0.0 }
 0x320   : > { %v2026_v63 = vpop.eup %1621  ;;  %v896_v0 = vpop.xlane.xlu1 %895  ;;  %970 = vadd.xlane.f32.xlu0 %v969_v62 }
 0x321   : > { %v899_v61 = vpop.xlane.xlu0 %898  ;;  %1635 = vpow2.f32 %v943_v60  ;;  %v916_v1 = vsub.f32 %v1983_v8, %v896_v0  ;;  %v972_v3 = vsel %vm854_vm1, %v2026_v63, 0.0 }
 0x322   : > { %v917_v2 = vsub.f32 %v1979_v5, %v899_v61  ;;  %v2032_v4 = vpop.eup %1623  ;;  %973 = vadd.xlane.f32.xlu1 %v972_v3 }
 0x323   : > { %v945_v6 = vmul.f32 1.442695, %v916_v1  ;;  %v963_v10 = vsel %vm854_vm1, %v2032_v4, 0.0 }
 0x324   : > { %v947_v7 = vmul.f32 1.442695, %v917_v2  ;;  %v2036_v11 = vpop.eup %1625  ;;  %v902_v12 = vpop.xlane.xlu1 %901  ;;  %964 = vadd.xlane.f32.xlu0 %v963_v10 }
 0x325   : > { %1637 = vpow2.f32 %v945_v6  ;;  %v918_v8 = vsub.f32 %v1985_v9, %v902_v12  ;;  %v966_v5 = vsel %vm854_vm1, %v2036_v11, 0.0 }
 0x326   : > { %v2041_v13 = vpop.eup %1627  ;;  %1639 = vpow2.f32 %v947_v7  ;;  %967 = vadd.xlane.f32.xlu1 %v966_v5 }
 0x327   : > { %v949_v14 = vmul.f32 1.442695, %v918_v8  ;;  %v981_v15 = vsel %vm854_vm1, %v2041_v13, 0.0 }
 0x328   : > { %v2045_v16 = vpop.eup %1629  ;;  %982 = vadd.xlane.f32.xlu0 %v981_v15 }
 0x329   : > { %1641 = vpow2.f32 %v949_v14  ;;  %v984_v17 = vsel %vm854_vm1, %v2045_v16, 0.0 }
 0x32a   : > { %v2049_v18 = vpop.eup %1631  ;;  %985 = vadd.xlane.f32.xlu1 %v984_v17 }
 0x32b   : > { %v975_v9 = vsel %vm854_vm1, %v2049_v18, 0.0 }
 0x32c   : > { %v2053_v19 = vpop.eup %1633  ;;  %976 = vadd.xlane.f32.xlu0 %v975_v9 }
 0x32d   : > { %v978_v20 = vsel %vm854_vm1, %v2053_v19, 0.0 }
 0x32e   : > { %v2057_v21 = vpop.eup %1635  ;;  %979 = vadd.xlane.f32.xlu1 %v978_v20 }
 0x32f   : > { %v987_v22 = vsel %vm854_vm1, %v2057_v21, 0.0 }
 0x330   : > { %988 = vadd.xlane.f32.xlu0 %v987_v22 }
 0x332   : > { %v2061_v23 = vpop.eup %1637 }
 0x333   : > { %v2063_v24 = vpop.eup %1639  ;;  %v990_v25 = vsel %vm854_vm1, %v2061_v23, 0.0 }
 0x334   : > { %991 = vadd.xlane.f32.xlu1 %v990_v25  ;;  %v993_v26 = vsel %vm854_vm1, %v2063_v24, 0.0 }
 0x335   : > { %994 = vadd.xlane.f32.xlu0 %v993_v26 }
 0x336   : > { %v2069_v27 = vpop.eup %1641 }
 0x337   : > { %v996_v28 = vsel %vm854_vm1, %v2069_v27, 0.0 }
 0x338   : > { %997 = vadd.xlane.f32.xlu1 %v996_v28 }
 0x39f   : > { %v959_v29 = vpop.xlane.xlu0 %958 }
 0x3a0   : > { %1643 = vrcp.f32 %v959_v29 }
 0x3a3   : > { %v962_v30 = vpop.xlane.xlu1 %961  ;;  %v953_v31 = vpop.xlane.xlu0 %952 }
 0x3a4   : > { %1645 = vrcp.f32 %v962_v30 }
 0x3a5   : > { %1647 = vrcp.f32 %v953_v31 }
 0x3a7   : > { %v956_v32 = vpop.xlane.xlu1 %955 }
 0x3a8   : > { %1649 = vrcp.f32 %v956_v32 }
 0x3a9   : > { %v971_v33 = vpop.xlane.xlu0 %970 }
 0x3aa   : > { %1651 = vrcp.f32 %v971_v33 }
 0x3ab   : > { %v974_v34 = vpop.xlane.xlu1 %973 }
 0x3ac   : > { %1653 = vrcp.f32 %v974_v34 }
 0x3ad   : > { %v1644_v35 = vpop.eup %1643  ;;  %v965_v37 = vpop.xlane.xlu0 %964 }
 0x3ae   : > { %v1004_v38 = vmul.f32 %v1644_v35, %v2001_v36  ;;  %1655 = vrcp.f32 %v965_v37 }
 0x3af   : > { %v968_v39 = vpop.xlane.xlu1 %967 }
 0x3b0   : > { %1033 = vst.msk [vmem:[%s2075_s11 + $0x10] sm:$0xff] %vm854_vm1, %v1004_v38  ;;  %1657 = vrcp.f32 %v968_v39 }
 0x3b1   : > { %v1646_v40 = vpop.eup %1645  ;;  %v983_v42 = vpop.xlane.xlu0 %982 }
 0x3b2   : > { %v1648_v43 = vpop.eup %1647  ;;  %v1006_v44 = vmul.f32 %v1646_v40, %v2009_v45  ;;  %1659 = vrcp.f32 %v983_v42 }
 0x3b3   : > { %v1000_v46 = vmul.f32 %v1648_v43, %v2006_v41  ;;  %v986_v36 = vpop.xlane.xlu1 %985 }
 0x3b4   : > { %1034 = vst.msk [vmem:[%s2075_s11 + $0x18] sm:$0xff] %vm854_vm1, %v1006_v44  ;;  %1661 = vrcp.f32 %v986_v36 }
 0x3b5   : > { %v1650_v47 = vpop.eup %1649  ;;  %1031 = vst.msk [vmem:[%s2075_s11] sm:$0xff] %vm854_vm1, %v1000_v46  ;;  %v977_v48 = vpop.xlane.xlu0 %976 }
 0x3b6   : > { %v1002_v49 = vmul.f32 %v1650_v47, %v2016_v51  ;;  %1663 = vrcp.f32 %v977_v48 }
 0x3b7   : > { %v1652_v50 = vpop.eup %1651  ;;  %v980_v52 = vpop.xlane.xlu1 %979 }
 0x3b8   : > { %1032 = vst.msk [vmem:[%s2075_s11 + $0x8] sm:$0xff] %vm854_vm1, %v1002_v49  ;;  %v1012_v41 = vmul.f32 %v1652_v50, %v2022_v59  ;;  %1665 = vrcp.f32 %v980_v52 }
 0x3b9   : > { %v1654_v45 = vpop.eup %1653  ;;  %v989_v53 = vpop.xlane.xlu0 %988 }
 0x3ba   : > { %1037 = vst.msk [vmem:[%s2075_s11 + $0x30] sm:$0xff] %vm854_vm1, %v1012_v41  ;;  %v1014_v54 = vmul.f32 %v1654_v45, %v2026_v63  ;;  %1667 = vrcp.f32 %v989_v53 }
 0x3bb   : > { %v1656_v55 = vpop.eup %1655 }
 0x3bc   : > { %1038 = vst.msk [vmem:[%s2075_s11 + $0x38] sm:$0xff] %vm854_vm1, %v1014_v54  ;;  %v1008_v51 = vmul.f32 %v1656_v55, %v2032_v4 }
 0x3bd   : > { %v1658_v56 = vpop.eup %1657  ;;  %v992_v58 = vpop.xlane.xlu1 %991 }
 0x3be   : > { %1035 = vst.msk [vmem:[%s2075_s11 + $0x20] sm:$0xff] %vm854_vm1, %v1008_v51  ;;  %v1010_v57 = vmul.f32 %v1658_v56, %v2036_v11  ;;  %1669 = vrcp.f32 %v992_v58  ;;  %v995_v59 = vpop.xlane.xlu0 %994 }
 0x3bf   : > { %v1660_v60 = vpop.eup %1659  ;;  %1671 = vrcp.f32 %v995_v59 }
 0x3c0   : > { %1036 = vst.msk [vmem:[%s2075_s11 + $0x28] sm:$0xff] %vm854_vm1, %v1010_v57  ;;  %v1020_v62 = vmul.f32 %v1660_v60, %v2041_v13 }
 0x3c1   : > { %v1662_v63 = vpop.eup %1661  ;;  %v998_v0 = vpop.xlane.xlu1 %997 }
 0x3c2   : > { %1041 = vst.msk [vmem:[%s2075_s11 + $0x50] sm:$0xff] %vm854_vm1, %v1020_v62  ;;  %v1022_v61 = vmul.f32 %v1662_v63, %v2045_v16  ;;  %1673 = vrcp.f32 %v998_v0 }
 0x3c3   : > { %v1664_v1 = vpop.eup %1663 }
 0x3c4   : > { %1042 = vst.msk [vmem:[%s2075_s11 + $0x58] sm:$0xff] %vm854_vm1, %v1022_v61  ;;  %v1016_v2 = vmul.f32 %v1664_v1, %v2049_v18 }
 0x3c5   : > { %v1666_v3 = vpop.eup %1665 }
 0x3c6   : > { %1039 = vst.msk [vmem:[%s2075_s11 + $0x40] sm:$0xff] %vm854_vm1, %v1016_v2  ;;  %v1018_v4 = vmul.f32 %v1666_v3, %v2053_v19 }
 0x3c7   : > { %v1668_v6 = vpop.eup %1667 }
 0x3c8   : > { %1040 = vst.msk [vmem:[%s2075_s11 + $0x48] sm:$0xff] %vm854_vm1, %v1018_v4  ;;  %v1024_v7 = vmul.f32 %v1668_v6, %v2057_v21 }
 0x3ca   : > { %1043 = vst.msk [vmem:[%s2075_s11 + $0x60] sm:$0xff] %vm854_vm1, %v1024_v7 }
 0x3cb   : > { %v1670_v10 = vpop.eup %1669 }
 0x3cc   : > { %v1672_v11 = vpop.eup %1671  ;;  %v1026_v12 = vmul.f32 %v1670_v10, %v2061_v23 }
 0x3cd   : > { %v1028_v8 = vmul.f32 %v1672_v11, %v2063_v24 }
 0x3ce   : > { %1044 = vst.msk [vmem:[%s2075_s11 + $0x68] sm:$0xff] %vm854_vm1, %v1026_v12  ;;  %1053 = sbr.rel (!%p1828_p4) target bundleno = 1020 (0x3fc), region = 52 }
 0x3cf   : > { %v1674_v5 = vpop.eup %1673  ;;  %1045 = vst.msk [vmem:[%s2075_s11 + $0x70] sm:$0xff] %vm854_vm1, %v1028_v8 }
 0x3d0   : > { %v1030_v13 = vmul.f32 %v1674_v5, %v2069_v27 }
 0x3d2   : > { %1046 = vst.msk [vmem:[%s2075_s11 + $0x78] sm:$0xff] %vm854_vm1, %v1030_v13 }
 0x3d3   : > { %s2240_s24 = smov (!%p1056_p8, %s1055_s24), 16 }
 0x3d4   : > { %s1361_s17 = sshll.u32 %s2240_s24, 7 }
 0x3d5   : > { %p1364_p9 = scmp.eq.s32.totalorder %s1361_s17, 0 }
 0x3d6   : > { %s2137_s18 = sshrl.u32 (!%p1364_p9), %s2240_s24, 4 }
 0x3d7   : > { %1064 = sbr.rel (%p1364_p9) target bundleno = 1020 (0x3fc), region = 56  ;;  %p1365_p10 = scmp.le.s32.totalorder (!%p1364_p9), %s2137_s18, 0 }
 0x3dc   : > { %1279 = sbr.rel (%p1365_p10) target bundleno = 1003 (0x3eb), region = 132  ;;  %s2233_s27 = smov (!%p1365_p10), %s2131_s16 }
 0x3dd   : > { %s2234_s9 = smov (!%p1365_p10), %s2075_s11  ;;  %s2146_s12 = smov (!%p1365_p10), 0  }
 0x3de   : > { %s2148_s19 = smov (!%p1365_p10), 0  }
 0x3e1 LB: >> { %v1157_v14 = vld [vmem:[%s1737_s9] sm:$0xff]  ;;  %v1159_v15 = vld [vmem:[%s1737_s9 + $0x8] sm:$0xff]  ;;  %v1161_v16 = vld [vmem:[%s1737_s9 + $0x10] sm:$0xff]  ;;  %s1189_s20 = sadd.s32 1, %s1741_s12  ;;  %s1151_s19 = sadd.s32 1, %s1745_s19   ;;  %s1745_s19 = sphi %s2148_s19, %s1151_s19   ;;  %s1741_s12 = sphi %s2146_s12, %s2235_s12   ;;  %s1737_s9 = sphi %s2234_s9, %s1194_s9   ;;  %s1733_s27 = sphi %s2233_s27, %s1195_s27  }
 0x3e2   : >> { %1158 = vst [vmem:[%s1733_s27] sm:$0xff] %v1157_v14  ;;  %1160 = vst [vmem:[%s1733_s27 + $0x8] sm:$0xff] %v1159_v15  ;;  %v1163_v17 = vld [vmem:[%s1737_s9 + $0x18] sm:$0xff]  ;;  %v1165_v18 = vld [vmem:[%s1737_s9 + $0x20] sm:$0xff]  ;;  %p1190_p11 = scmp.ge.s32.totalorder %s1189_s20, %s2137_s18  ;;  %p1150_p12 = scmp.ge.s32.totalorder %s1151_s19, %s2137_s18 }
 0x3e3   : >> { %1162 = vst [vmem:[%s1733_s27 + $0x10] sm:$0xff] %v1161_v16  ;;  %v1167_v9 = vld [vmem:[%s1737_s9 + $0x28] sm:$0xff]  ;;  %1164 = vst [vmem:[%s1733_s27 + $0x18] sm:$0xff] %v1163_v17  ;;  %v1169_v19 = vld [vmem:[%s1737_s9 + $0x30] sm:$0xff] }
 0x3e4   : >> { %1166 = vst [vmem:[%s1733_s27 + $0x20] sm:$0xff] %v1165_v18  ;;  %1168 = vst [vmem:[%s1733_s27 + $0x28] sm:$0xff] %v1167_v9  ;;  %v1171_v20 = vld [vmem:[%s1737_s9 + $0x38] sm:$0xff]  ;;  %v1173_v21 = vld [vmem:[%s1737_s9 + $0x40] sm:$0xff]  ;;  %s2242_s20 = smov (%p1190_p11, %s1189_s20), 0 }
 0x3e5   : >> { %1170 = vst [vmem:[%s1733_s27 + $0x30] sm:$0xff] %v1169_v19  ;;  %1172 = vst [vmem:[%s1733_s27 + $0x38] sm:$0xff] %v1171_v20  ;;  %v1175_v22 = vld [vmem:[%s1737_s9 + $0x48] sm:$0xff]  ;;  %v1177_v23 = vld [vmem:[%s1737_s9 + $0x50] sm:$0xff]  ;;  %s1366_s21 = sshll.u32 %s2242_s20, 7  ;;  %s2235_s12 = smov %s2242_s20 }
 0x3e6   : >> { %1174 = vst [vmem:[%s1733_s27 + $0x40] sm:$0xff] %v1173_v21  ;;  %v1179_v24 = vld [vmem:[%s1737_s9 + $0x58] sm:$0xff]  ;;  %1176 = vst [vmem:[%s1733_s27 + $0x48] sm:$0xff] %v1175_v22  ;;  %v1181_v25 = vld [vmem:[%s1737_s9 + $0x60] sm:$0xff]  ;;  %1153 = sbr.rel (!%p1150_p12) target bundleno = 993 (0x3e1), region = 138 }
 0x3e7   : >> { %1178 = vst [vmem:[%s1733_s27 + $0x50] sm:$0xff] %v1177_v23  ;;  %1180 = vst [vmem:[%s1733_s27 + $0x58] sm:$0xff] %v1179_v24  ;;  %v1183_v26 = vld [vmem:[%s1737_s9 + $0x68] sm:$0xff]  ;;  %v1185_v27 = vld [vmem:[%s1737_s9 + $0x70] sm:$0xff] }
 0x3e8   : >> { %1182 = vst [vmem:[%s1733_s27 + $0x60] sm:$0xff] %v1181_v25  ;;  %1184 = vst [vmem:[%s1733_s27 + $0x68] sm:$0xff] %v1183_v26  ;;  %v1187_v28 = vld [vmem:[%s1737_s9 + $0x78] sm:$0xff]  ;;  %s1194_s9 = scalar_lea.vmem %s2075_s11, %s1366_s21 [#allocation2]  }
 0x3e9   : >> { %1186 = vst [vmem:[%s1733_s27 + $0x70] sm:$0xff] %v1185_v27  ;;  %1188 = vst [vmem:[%s1733_s27 + $0x78] sm:$0xff] %v1187_v28  ;;  %s1195_s27 = scalar_lea.vmem %s2131_s16, %s1366_s21  }
 0x3eb PF: > { %s2206_s22 = sand.u32 15, %s2240_s24   ;;  %s1377_s23 = sshll.u32 %s2137_s18, 7 }
 0x3ec   : > { %s1200_s26 = scalar_lea.vmem %s2075_s11, %s1377_s23 [#allocation2]   ;;  %s1202_s29 = scalar_lea.vmem %s2131_s16, %s1377_s23  }
 0x3ed   : > { %p1371_p13 = scmp.le.s32.totalorder %s2206_s22, 0 }
 0x3ee   : > { %s1747_s30 = smov (!%p1371_p13), %s1202_s29   ;;  %s1751_s10 = smov (!%p1371_p13), %s1200_s26  }
 0x3ef   : > { %1293 = sbr.rel (%p1371_p13) target bundleno = 1020 (0x3fc), region = 143  ;;  %s1755_s13 = smov (!%p1371_p13), 0  }
 0x3f0   : > { %s1759_s14 = smov (!%p1371_p13), 0  }
 0x3f4 LB: >> { %v1212_v29 = vld [vmem:[%s1753_s10] sm:$0xff]  ;;  %s1214_s24 = sadd.s32 1, %s1757_s13  ;;  %s1206_s14 = sadd.s32 1, %s1761_s14   ;;  %s1761_s14 = sphi %s1759_s14, %s1206_s14   ;;  %s1757_s13 = sphi %s1755_s13, %s1756_s13   ;;  %s1753_s10 = sphi %s1751_s10, %s1219_s10   ;;  %s1749_s30 = sphi %s1747_s30, %s1220_s30  }
 0x3f5   : >> { %1213 = vst [vmem:[%s1749_s30] sm:$0xff] %v1212_v29  ;;  %p1215_p0 = scmp.ge.s32.totalorder %s1214_s24, %s2206_s22  ;;  %p1205_p1 = scmp.ge.s32.totalorder %s1206_s14, %s2206_s22 }
 0x3f7   : >> { %s2244_s24 = smov (%p1215_p0, %s1214_s24), 0  ;;  %1208 = sbr.rel (!%p1205_p1) target bundleno = 1012 (0x3f4), region = 149 }
 0x3f8   : >> { %s1372_s11 = sshll.u32 %s2244_s24, 3  ;;  %s1756_s13 = smov %s2244_s24  }
 0x3f9   : >> { %s1219_s10 = scalar_lea.vmem %s1200_s26, %s1372_s11 [#allocation2]   ;;  %s1220_s30 = scalar_lea.vmem %s1202_s29, %s1372_s11  }
 0x3fc PF: > { %p14_p2 = scmp.ge.s32.totalorder %s1818_s28, 5   ;;  %s2236_s24 = smov %s1725_s25 }
 0x3fd   : > { %s2237_s25 = smov %s1826_s8  ;;  %s2238_s26 = smov %s1818_s28 }
 0x3fe   :  { %16 = sbr.rel (!%p14_p2) target bundleno = 2 (0x2), region = 160 }

</bundles_post_ra>
